<compile_context>
chip_gen: v7x
topology: tpu7x:2x2x1
jax: 0.10.0
libtpu: 0.0.40
codegen_flags: <defaults>
</compile_context>

<pallas_src>
import math

import jax
import jax.numpy as jnp
from jax.experimental import pallas as pl
from jax.experimental.pallas import tpu as pltpu


def _round_up(x, m):
    return ((x + m - 1) // m) * m


def _mhd_kernel(x_ref, w_ref, o_ref):
    # x_ref: (tm, d)  streamed input tile
    # w_ref: (d, tn)  resident weight (panel); tn == d in the common case
    # o_ref: (tm, tn) output tile -- single MXU pass, f32 accumulation
    o_ref[...] = jnp.dot(
        x_ref[...], w_ref[...], preferred_element_type=jnp.float32
    ).astype(o_ref.dtype)


def multi_head_dense(x, weight, *, compute_dtype=jnp.bfloat16, tm_target=512):
    """x: (b, wh, d), weight: (d, d) -> (b, wh, d). Matches torch.bmm(x, W.repeat(b,1,1))."""
    b, wh, d = x.shape
    assert weight.shape == (d, d)

    M = b * wh
    out_dtype = x.dtype

    cb = jnp.dtype(compute_dtype).itemsize
    ob = jnp.dtype(out_dtype).itemsize
    base = 16 if cb == 2 else 8  # bf16 sublane packing -> 16-row granularity

    # --- N tile: keep the whole (d, d) weight resident whenever it fits ---
    W_BUDGET = 8 * 1024 * 1024
    if d * d * cb <= W_BUDGET:
        tn = d  # full-extent block: exempt from the 128-lane divisibility rule
    else:
        tn = max(256, ((W_BUDGET // (d * cb)) // 256) * 256)

    # --- M tile: as big as the VMEM budget allows (kernel is HBM-bound) ---
    TOTAL_BUDGET = 24 * 1024 * 1024  # headroom under v7x 32 MiB scoped default

    def vmem_est(tm_):
        # double-buffered x tile + (conservatively double-buffered) W panel
        # + double-buffered output tile
        return 2 * tm_ * d * cb + 2 * d * tn * cb + 2 * tm_ * tn * ob

    tm = _round_up(min(tm_target, _round_up(M, base)), base)
    while tm > base and vmem_est(tm) > TOTAL_BUDGET:
        tm = _round_up(max(base, tm // 2), base)
    # v7x has 2 TensorCores: give the parallel M axis >= 2 steps when possible.
    if pl.cdiv(M, tm) == 1 and M >= 2 * base:
        tm = _round_up(pl.cdiv(M, 2), base)

    nm = pl.cdiv(M, tm)   # M blocks (partial edge block masked by Pallas)
    nb = pl.cdiv(d, tn)   # weight column panels (1 in the common case)

    # bf16 at the kernel boundary; no padding passes over HBM.
    x_c = x.reshape(M, d).astype(compute_dtype)
    w_c = weight.astype(compute_dtype)

    cost = pl.CostEstimate(
        flops=2 * M * d * d,
        transcendentals=0,
        # x read once per weight panel, W read once, output written once
        bytes_accessed=nb * M * d * cb + d * d * cb + M * d * ob,
    )

    out = pl.pallas_call(
        _mhd_kernel,
        out_shape=jax.ShapeDtypeStruct((M, d), out_dtype),
        grid_spec=pltpu.PrefetchScalarGridSpec(
            num_scalar_prefetch=0,
            # panel axis outermost (W fetched once per panel), M innermost
            grid=(nb, nm),
            in_specs=[
                pl.BlockSpec((tm, d), lambda j, i: (i, 0)),   # streamed x
                pl.BlockSpec((d, tn), lambda j, i: (0, j)),   # resident W panel
            ],
            out_specs=pl.BlockSpec((tm, tn), lambda j, i: (i, j)),
        ),
        compiler_params=pltpu.CompilerParams(
            dimension_semantics=("parallel", "parallel"),
            vmem_limit_bytes=32 * 1024 * 1024,  # >= v5e default, safe on v7x
        ),
        cost_estimate=cost,
    )(x_c, w_c)

    return out.reshape(b, wh, d)


def init_weight(key, d):
    # nn.init.kaiming_uniform_(w, a=sqrt(5)) on a (d, d) tensor:
    # gain = sqrt(2 / (1 + 5)) = sqrt(1/3); bound = sqrt(3)*gain/sqrt(fan_in)
    #       = 1 / sqrt(d)   (fan_in = d)
    bound = 1.0 / math.sqrt(d)
    return jax.random.uniform(key, (d, d), jnp.float32, -bound, bound)


if __name__ == "__main__":
    key = jax.random.PRNGKey(0)
    kx, kw, kx2, kw2 = jax.random.split(key, 4)

    mhd = jax.jit(multi_head_dense)

    # Small shape consistent with the module's forward: x (b, wh, d)
    b, wh, d = 2, 8, 32
    x = jax.random.normal(kx, (b, wh, d), jnp.float32)
    w = init_weight(kw, d)

    out = jax.block_until_ready(mhd(x, w))
    ref = jnp.einsum("bwd,de->bwe", x, w)
    assert out.shape == (b, wh, d)
    # bf16 compute (f32 accumulation) -> relaxed tolerance vs f32 reference.
    assert jnp.allclose(out, ref, atol=3e-2, rtol=3e-2)

    # Second check: exercises a multi-step M grid with a masked partial block.
    b2, wh2, d2 = 4, 300, 64
    x2 = jax.random.normal(kx2, (b2, wh2, d2), jnp.float32)
    w2 = init_weight(kw2, d2)
    out2 = jax.block_until_ready(mhd(x2, w2))
    ref2 = jnp.einsum("bwd,de->bwe", x2, w2)
    assert out2.shape == (b2, wh2, d2)
    assert jnp.allclose(out2, ref2, atol=3e-2, rtol=3e-2)

    print("KERNEL_OK")
</pallas_src>

<mosaic_0001>
module attributes {stable_mosaic.version = 11 : i64} {
  func.func @_mhd_kernel(%arg0: i32, %arg1: i32, %arg2: memref<16x32xbf16, #tpu.memory_space<vmem>>, %arg3: memref<32x32xbf16, #tpu.memory_space<vmem>>, %arg4: memref<16x32xf32, #tpu.memory_space<vmem>>) attributes {dimension_semantics = [#tpu.dimension_semantics<parallel>, #tpu.dimension_semantics<parallel>], iteration_bounds = array<i64: 1, 1>, scalar_prefetch = 0 : i64, scratch_operands = 0 : i64, tpu.core_type = #tpu.core_type<tc>, window_params = [{transform_indices = @transform_0, window_bounds = array<i64: 16, 32>}, {transform_indices = @transform_1, window_bounds = array<i64: 32, 32>}, {transform_indices = @transform_2, window_bounds = array<i64: 16, 32>}]} {
    %c0 = arith.constant 0 : index
    %c0_0 = arith.constant 0 : index
    %0 = vector.load %arg2[%c0, %c0_0] : memref<16x32xbf16, #tpu.memory_space<vmem>>, vector<16x32xbf16>
    %c0_1 = arith.constant 0 : index
    %c0_2 = arith.constant 0 : index
    %1 = vector.load %arg3[%c0_1, %c0_2] : memref<32x32xbf16, #tpu.memory_space<vmem>>, vector<32x32xbf16>
    %cst = arith.constant dense<0.000000e+00> : vector<16x32xf32>
    %2 = tpu.matmul %0, %1, %cst {dimension_numbers = #tpu.dot_dimension_numbers<[1], [0], [0], [1], [0, 0, 1, 1], [], []>} : vector<16x32xbf16>, vector<32x32xbf16>, vector<16x32xf32> -> vector<16x32xf32>
    %c0_3 = arith.constant 0 : index
    %c0_4 = arith.constant 0 : index
    %3 = vector.load %arg4[%c0_3, %c0_4] : memref<16x32xf32, #tpu.memory_space<vmem>>, vector<16x32xf32>
    tpu.vector_store %arg4[%c0_3, %c0_4], %2 {strides = array<i32>} : memref<16x32xf32, #tpu.memory_space<vmem>>, vector<16x32xf32>,
    return
  }
  func.func @transform_0(%arg0: i32, %arg1: i32) -> (i32, i32) {
    %c0_i32 = arith.constant 0 : i32
    %c0_i32_0 = arith.constant 0 : i32
    return %arg1, %c0_i32 : i32, i32
  }
  func.func @transform_1(%arg0: i32, %arg1: i32) -> (i32, i32) {
    %c0_i32 = arith.constant 0 : i32
    %c0_i32_0 = arith.constant 0 : i32
    return %c0_i32, %arg0 : i32, i32
  }
  func.func @transform_2(%arg0: i32, %arg1: i32) -> (i32, i32) {
    %c0_i32 = arith.constant 0 : i32
    return %arg1, %arg0 : i32, i32
  }
}

</mosaic_0001>

<bundles_post_ra>
// kernel: multi_head_dense.1
= control target key start
LH: loop header
LB: loop body
LE: loop exit
PB: predicated region body
PF: predicated region fallthrough
CT: control target
= control target key end

     0   :  { %v146_v1 = vmov 0.0   ;;  %vm147_vm0 = vmmov 0   ;;  %s187_s0 = inlined_call_operand.vmem [shape: bf16[16,32], index: 0, kind: input, shape index: {}]   ;;  %s188_s1 = inlined_call_operand.vmem [shape: bf16[32,32], index: 1, kind: input, shape index: {}]   ;;  %s189_s2 = inlined_call_operand.hbm [shape: f32[16,32], index: 2, kind: output, shape index: {}]  }
   0x1   :  { %v119_v0 = vld [vmem:[%s188_s1] sm:$0xff]   ;;  %106 = vmatprep.subr.bf16.mxu0 %v146_v1  ;;  %v120_v2 = vld [vmem:[%s188_s1 + $0x8] sm:$0xff]   ;;  %110 = vmatprep.mubr.msk.bf16.mxu0 %vm147_vm0, %v146_v1 }
   0x2   :  { %107 = vmatpush3.bf16.msra.mxu0 %v119_v0 }
   0x3   :  { %108 = vmatprep.subr.bf16.mxu0 %v146_v1 }
   0x4   :  { %7 = vsyncpa [#allocation3], 0  ;;  %v121_v3 = vld [vmem:[%s187_s0] sm:$0xff]   ;;  %vm36_vm1 = vcmask 261120   ;;  %s148_s15 = smov [#allocation2]  }
   0x5   :  { %s88_s16 = sshll.u32 %s148_s15, 4  ;;  %s89_s16 = int_to_ptr.vmem [resolvable:$true] %s88_s16 }
   0x6   :  { %109 = vmatpush3.bf16.msra.mxu0 %v120_v2  ;;  %s122_s1 = scalar_lea.vmem %s89_s16, 256  ;;  %p127_p1 = scmp.lt.s32.totalorder %s89_s16, %s89_s16 }
   0x7   :  { %p123_p0 = scmp.ne.s32.totalorder %s89_s16, %s122_s1  ;;  %p128_p2 = scmp.lt.s32.totalorder %s122_s1, %s122_s1 }
   0x9   :  { %111 = vmatmul.mubr.msk.bf16.vlgmr.msra.gmra.mrb[0].mxu0 %vm36_vm1, %v121_v3  ;;  %p129_p3 = por %p128_p2, %p127_p1 }
   0xb   :  { %p130_p4 = pnand %p129_p3, %p123_p0 }
  0xdc   :  { %v74_v4 = vpop.f32.mrb[0].mxu0 }
  0xdd   :  { %81 = vst.msk [vmem:[#allocation2] sm:$0xff] %vm36_vm1, %v74_v4  ;;  %v112_v5 = vpop.f32.mrb[1].mxu0 }
  0xde   :  { %v77_v6 = vpop.f32.mrb[2].mxu0 }
  0xdf   :  { %82 = vst.msk [vmem:[#allocation2 + $0x8] sm:$0xff] %vm36_vm1, %v77_v6  ;;  %v113_v7 = vpop.f32.mrb[3].mxu0 }
  0xe0   :  { %133 = shalt.err (!%p130_p4)
}
  0xe1   :  { %s134_s18 = scalar_lea.hbm %s189_s2, 256 }
  0xe2   :  { %p135_p5 = scmp.ne.s32.totalorder %s189_s2, %s134_s18  ;;  %p138_p6 = scmp.lt.u32.totalorder %s134_s18, %s189_s2 }
  0xe4   :  { %p140_p7 = pnand %p138_p6, %p135_p5 }
  0xe6   :  { %143 = shalt.err (!%p140_p7)
}
  0xe7   :  { %s149_s23 = smov 128   ;;  %s150_s24 = smov 8  }
  0xe8   :  { %94 = dma.vmem_to_hbm [thread:$0]  %s89_s16, 256, %s189_s2, [#allocation3], %s149_s23, %s149_s23, %s150_s24  }
  0xe9   :  { %144 = dma.done.wait [#allocation3], 256  }
  0xea   :  { %145 = vsyncadd [#allocation3], 4294967040 }
  0xeb   :  { %98 = vsyncpa [#allocation3], 1 }

</bundles_post_ra>
